<compile_context>
chip_gen: v7x
topology: tpu7x:2x2x1
jax: 0.10.0
libtpu: 0.0.40
codegen_flags: <defaults>
</compile_context>

<pallas_src>
import functools
import math

import jax
import jax.numpy as jnp
from jax.experimental import pallas as pl
from jax.experimental.pallas import tpu as pltpu


# ---------------------------------------------------------------------------
# Kernel bodies
# ---------------------------------------------------------------------------

def _attend_and_write(x, y, vx, walt_t_ref, balt_ref, out_ref, *,
                      rewrite_scores, add_residual):
    """Scores + softmax + attention-weighted values; writes out_ref.

    x  : (TB, C, E) compute dtype
    y  : (TB, C, E) fp32, already scaled by 1/sqrt(C) (folded into fc weights)
    vx : (TB, C, E) fp32
    """
    tb, c, e = x.shape
    cdt = x.dtype
    balt = balt_ref[...].astype(jnp.float32)                        # (1, C)

    if rewrite_scores:
        # C < E: transpose-free rewrite
        #   scores[t,c,k] = sum_d (y_t x_t^T)[c,d] * Walt^T[d,k]
        #                   + balt[k] * rowsum(y)[t,c]
        s = jnp.einsum('tce,tde->tcd', y.astype(cdt), x,
                       preferred_element_type=jnp.float32)           # (TB,C,C)
        # Cheap (C^3) second matmul stays fp32 so the fp32 intermediate `s`
        # is never double-rounded on the bf16 path.
        scores = jnp.dot(s.reshape(tb * c, c),
                         walt_t_ref[...].astype(jnp.float32),
                         preferred_element_type=jnp.float32).reshape(tb, c, c)
        scores = scores + jnp.sum(y, axis=-1, keepdims=True) * balt
    else:
        # C >= E: original two-matmul grouping (2*E*C^2 MACs) is cheaper.
        # One XLU transpose of x per block; hidden under the MXU.
        xt = jnp.swapaxes(x, 1, 2)                                   # (TB, E, C)
        yx = (jnp.dot(xt.reshape(tb * e, c), walt_t_ref[...],
                      preferred_element_type=jnp.float32)
              .reshape(tb, e, c) + balt)                             # (TB, E, C)
        scores = jnp.einsum('tce,tek->tck', y.astype(cdt), yx.astype(cdt),
                            preferred_element_type=jnp.float32)      # (TB,C,C)

    # Numerically stable softmax over the last dim (1/sqrt(C) already folded).
    m = jnp.max(scores, axis=-1, keepdims=True)
    p = jnp.exp(scores - m)
    d = jnp.sum(p, axis=-1, keepdims=True)
    r = pl.reciprocal(d, approx=True)            # EUP slot (free under MXU)
    r = r * (2.0 - d * r)                        # one Newton step -> fp32 accuracy
    attn = p * r

    out = jnp.einsum('tck,tke->tce', attn.astype(cdt), vx.astype(cdt),
                     preferred_element_type=jnp.float32)
    if add_residual:                             # post_feed == 'x+y'
        out = out + x.astype(jnp.float32)
    out_ref[...] = out.astype(out_ref.dtype)


def _fork_kernel_fused(x_ref, wcat_ref, bcat_ref, walt_t_ref, balt_ref, out_ref,
                       *, rewrite_scores, add_residual):
    # Fused fc+vfc projection; used only when E % 128 == 0 so the yv split
    # lands on a 128-lane boundary (copy-free slices).
    tb, c, e = x_ref.shape
    x = x_ref[...]
    x2 = x.reshape(tb * c, e)
    yv = jnp.dot(x2, wcat_ref[...],
                 preferred_element_type=jnp.float32) + bcat_ref[...]
    yv = yv.reshape(tb, c, 2 * e)
    y = yv[:, :, :e]                             # (1/sqrt(C)) * fc(x), fp32
    vx = yv[:, :, e:]                            # vfc(x), fp32
    _attend_and_write(x, y, vx, walt_t_ref, balt_ref, out_ref,
                      rewrite_scores=rewrite_scores, add_residual=add_residual)


def _fork_kernel_split(x_ref, wfc_t_ref, bfc_ref, wvfc_t_ref, bvfc_ref,
                       walt_t_ref, balt_ref, out_ref,
                       *, rewrite_scores, add_residual):
    # Separate fc / vfc projections; used when E % 128 != 0 to avoid an
    # unaligned lane slice (relayout) of the fused fp32 result.
    tb, c, e = x_ref.shape
    x = x_ref[...]
    x2 = x.reshape(tb * c, e)
    y = (jnp.dot(x2, wfc_t_ref[...], preferred_element_type=jnp.float32)
         + bfc_ref[...]).reshape(tb, c, e)
    vx = (jnp.dot(x2, wvfc_t_ref[...], preferred_element_type=jnp.float32)
          + bvfc_ref[...]).reshape(tb, c, e)
    _attend_and_write(x, y, vx, walt_t_ref, balt_ref, out_ref,
                      rewrite_scores=rewrite_scores, add_residual=add_residual)


# ---------------------------------------------------------------------------
# Host-side helpers
# ---------------------------------------------------------------------------

def _num_tensorcores():
    # Only multi-TensorCore parts (v7x, megacore v3/v4) benefit from keeping
    # >= 2 "parallel" grid steps; v5e/v6e have a single TensorCore.
    try:
        kind = jax.devices()[0].device_kind.lower()
    except Exception:
        return 1
    return 2 if any(tag in kind for tag in ("v7", "v4", "v3")) else 1


def _step_vmem_bytes(tb, C, E, cdt_bytes, io_bytes):
    # One grid step's VMEM working set: pipelined x/out blocks, single-buffered
    # weights, fp32 intermediates.
    x_blk = 2 * tb * C * E * cdt_bytes                  # x block, double-buffered
    o_blk = 2 * tb * C * E * io_bytes                   # out block, double-buffered
    weights = 2 * E * E * cdt_bytes                     # projection weights (1 buf)
    weights += C * C * 4 + (2 * E + C) * 4              # walt_t + biases
    inter = tb * C * 2 * E * 4                          # y, vx fp32
    inter += 4 * tb * C * C * 4                         # s / scores / p / attn fp32
    inter += 2 * tb * C * E * cdt_bytes                 # compute-dtype casts
    return x_blk + o_blk + weights + inter


def _default_block_b(B, C, E, cdt_bytes, io_bytes, budget_bytes=40 << 20):
    ncores = _num_tensorcores()
    best = 1
    for tb in range(1, B + 1):
        if B % tb:
            continue
        if _step_vmem_bytes(tb, C, E, cdt_bytes, io_bytes) > budget_bytes:
            continue
        if ncores > 1 and B >= ncores and B // tb < ncores:
            continue                                    # keep >= ncores grid steps
        best = tb
    return best


def _vmem_limit_bytes(tb, C, E, cdt_bytes, io_bytes):
    need = _step_vmem_bytes(tb, C, E, cdt_bytes, io_bytes)
    # ~1.5x headroom for compiler scratch, clamped to a range that is safe on
    # every generation (v7x physical VMEM is 64 MiB; scoped defaults 16-32 MiB).
    return int(min(max(int(need * 1.5) + (4 << 20), 16 << 20), 64 << 20))


def _const_spec(shape):
    index_map = lambda b: (0,) * len(shape)
    try:
        # Grid-invariant operand: it is never re-DMA'd, so one buffer suffices.
        return pl.BlockSpec(shape, index_map, pipeline_mode=pl.Buffered(1))
    except (TypeError, AttributeError):
        return pl.BlockSpec(shape, index_map)


# ---------------------------------------------------------------------------
# Public wrapper
# ---------------------------------------------------------------------------

def fork_attention(x, wfc, bfc, walt, balt, wvfc, bvfc, *, mask=None,
                   post_feed=None, block_b=None, compute_dtype=jnp.bfloat16):
    """ForkAttention forward pass (weights in torch nn.Linear convention)."""
    if mask is not None:
        # TODO(synk): masked_fill(-inf) path not implemented.
        raise NotImplementedError("mask is not supported by this kernel")

    add_residual = False
    host_post = None
    if post_feed is None or post_feed == 'y':
        pass
    elif post_feed == 'x+y':
        add_residual = True
    elif callable(post_feed):
        host_post = post_feed                    # applied on the host afterwards
    else:
        raise ValueError(f"Invalid post-feed: {post_feed}")

    B, C, E = x.shape
    cdt = jnp.dtype(compute_dtype)
    io_dtype = x.dtype
    if block_b is None:
        block_b = _default_block_b(B, C, E, cdt.itemsize, io_dtype.itemsize)
    if B % block_b != 0:
        raise ValueError(f"block_b={block_b} must divide batch={B}")

    inv = 1.0 / math.sqrt(C)
    rewrite = C < E            # transpose-free rewrite only when it saves MACs
    fuse = (E % 128 == 0)      # fused projection only if the split is lane-aligned

    # walt^T stays fp32 on the rewrite path (exact cheap C^3 matmul); on the
    # two-matmul path it feeds the MXU in compute dtype.
    walt_t = walt.T.astype(jnp.float32 if rewrite else cdt)          # (C, C)
    balt_row = balt.reshape(1, C).astype(jnp.float32)
    xc = x.astype(cdt)

    if fuse:
        # wcat = [Wfc^T / sqrt(C) | Wvfc^T]; softmax scale folded into fc.
        wcat = jnp.concatenate([wfc.T * inv, wvfc.T], axis=1).astype(cdt)
        bcat = jnp.concatenate([bfc * inv, bvfc]).reshape(1, 2 * E).astype(jnp.float32)
        operands = (xc, wcat, bcat, walt_t, balt_row)
        weight_specs = [_const_spec((E, 2 * E)), _const_spec((1, 2 * E)),
                        _const_spec((C, C)), _const_spec((1, C))]
        kernel = functools.partial(_fork_kernel_fused,
                                   rewrite_scores=rewrite,
                                   add_residual=add_residual)
    else:
        wfc_t = (wfc.T * inv).astype(cdt)
        bfc_r = (bfc * inv).reshape(1, E).astype(jnp.float32)
        wvfc_t = wvfc.T.astype(cdt)
        bvfc_r = bvfc.reshape(1, E).astype(jnp.float32)
        operands = (xc, wfc_t, bfc_r, wvfc_t, bvfc_r, walt_t, balt_row)
        weight_specs = [_const_spec((E, E)), _const_spec((1, E)),
                        _const_spec((E, E)), _const_spec((1, E)),
                        _const_spec((C, C)), _const_spec((1, C))]
        kernel = functools.partial(_fork_kernel_split,
                                   rewrite_scores=rewrite,
                                   add_residual=add_residual)

    out = pl.pallas_call(
        kernel,
        out_shape=jax.ShapeDtypeStruct((B, C, E), io_dtype),
        grid_spec=pltpu.PrefetchScalarGridSpec(
            num_scalar_prefetch=0,
            grid=(B // block_b,),
            in_specs=[pl.BlockSpec((block_b, C, E), lambda b: (b, 0, 0))]
                     + weight_specs,
            out_specs=pl.BlockSpec((block_b, C, E), lambda b: (b, 0, 0)),
        ),
        compiler_params=pltpu.CompilerParams(
            dimension_semantics=("parallel",),
            vmem_limit_bytes=_vmem_limit_bytes(block_b, C, E, cdt.itemsize,
                                               io_dtype.itemsize)),
    )(*operands)

    return host_post(x, out) if host_post is not None else out


# ---------------------------------------------------------------------------
# Pure-JAX reference + self-test
# ---------------------------------------------------------------------------

def fork_attention_ref(x, wfc, bfc, walt, balt, wvfc, bvfc, post_feed=None):
    y = jnp.einsum('bce,fe->bcf', x, wfc) + bfc
    xx = jnp.transpose(x, (0, 2, 1))                     # b e c
    yx = jnp.einsum('bec,kc->bek', xx, walt) + balt
    attn = jnp.einsum('bce,bek->bck', y, yx)
    attn = jax.nn.softmax(attn / math.sqrt(attn.shape[-1]), axis=-1)
    vx = jnp.einsum('bce,fe->bcf', x, wvfc) + bvfc
    out = jnp.einsum('bck,bke->bce', attn, vx)
    return x + out if post_feed == 'x+y' else out


def _make_params(key, C, E):
    k_wfc, k_bfc, k_walt, k_balt, k_wvfc, k_bvfc = jax.random.split(key, 6)
    lim_e = 1.0 / math.sqrt(E)
    lim_c = 1.0 / math.sqrt(C)
    wfc = jax.random.uniform(k_wfc, (E, E), jnp.float32, -lim_e, lim_e)
    bfc = jax.random.uniform(k_bfc, (E,), jnp.float32, -lim_e, lim_e)
    walt = jax.random.uniform(k_walt, (C, C), jnp.float32, -lim_c, lim_c)
    balt = jax.random.uniform(k_balt, (C,), jnp.float32, -lim_c, lim_c)
    wvfc = jax.random.uniform(k_wvfc, (E, E), jnp.float32, -lim_e, lim_e)
    bvfc = jax.random.uniform(k_bvfc, (E,), jnp.float32, -lim_e, lim_e)
    return wfc, bfc, walt, balt, wvfc, bvfc


if __name__ == "__main__":
    key = jax.random.PRNGKey(0)

    configs = [
        # (B, C, E): exercises the transpose-free (C<E) and two-matmul (C>=E)
        # scores paths, plus the split- and fused- (E % 128 == 0) projections.
        (2, 8, 32),     # split projection, transpose-free scores
        (2, 16, 8),     # split projection, two-matmul scores (C >= E)
        (2, 8, 128),    # fused projection (lane-aligned split)
    ]
    for idx, (B, C, E) in enumerate(configs):
        key, k_x, k_p = jax.random.split(key, 3)
        x = jax.random.normal(k_x, (B, C, E), dtype=jnp.float32)
        params = _make_params(k_p, C, E)
        ref = fork_attention_ref(x, *params)

        # fp32 compute path, default (VMEM / generation-aware) batch packing.
        out = jax.block_until_ready(
            fork_attention(x, *params, compute_dtype=jnp.float32))
        assert out.shape == (B, C, E)
        assert jnp.allclose(out, ref, atol=2e-3, rtol=2e-3), f"fp32 mismatch {idx}"

        # Default bf16 compute (fp32 accumulate + fp32 softmax), full batch packed.
        out_bf16 = jax.block_until_ready(fork_attention(x, *params, block_b=B))
        assert jnp.allclose(out_bf16, ref, atol=1e-1, rtol=1e-1), \
            f"bf16 mismatch {idx}"

    # post_feed='x+y' residual variant.
    B, C, E = 2, 8, 32
    key, k_x, k_p = jax.random.split(key, 3)
    x = jax.random.normal(k_x, (B, C, E), dtype=jnp.float32)
    params = _make_params(k_p, C, E)
    out_res = jax.block_until_ready(
        fork_attention(x, *params, post_feed='x+y', compute_dtype=jnp.float32))
    ref_res = fork_attention_ref(x, *params, post_feed='x+y')
    assert jnp.allclose(out_res, ref_res, atol=2e-3, rtol=2e-3), "x+y mismatch"

    print("KERNEL_OK")
</pallas_src>

<mosaic_0001>
module attributes {stable_mosaic.version = 11 : i64} {
  func.func @_fork_kernel_split(%arg0: i32, %arg1: memref<2x8x32xf32, #tpu.memory_space<vmem>>, %arg2: memref<32x32xf32, #tpu.memory_space<vmem>>, %arg3: memref<1x32xf32, #tpu.memory_space<vmem>>, %arg4: memref<32x32xf32, #tpu.memory_space<vmem>>, %arg5: memref<1x32xf32, #tpu.memory_space<vmem>>, %arg6: memref<8x8xf32, #tpu.memory_space<vmem>>, %arg7: memref<1x8xf32, #tpu.memory_space<vmem>>, %arg8: memref<2x8x32xf32, #tpu.memory_space<vmem>>) attributes {dimension_semantics = [#tpu.dimension_semantics<parallel>], iteration_bounds = array<i64: 1>, scalar_prefetch = 0 : i64, scratch_operands = 0 : i64, tpu.core_type = #tpu.core_type<tc>, window_params = [{transform_indices = @transform_0, window_bounds = array<i64: 2, 8, 32>}, {pipeline_mode = #tpu.pipeline_mode<synchronous>, transform_indices = @transform_1, window_bounds = array<i64: 32, 32>}, {pipeline_mode = #tpu.pipeline_mode<synchronous>, transform_indices = @transform_2, window_bounds = array<i64: 1, 32>}, {pipeline_mode = #tpu.pipeline_mode<synchronous>, transform_indices = @transform_3, window_bounds = array<i64: 32, 32>}, {pipeline_mode = #tpu.pipeline_mode<synchronous>, transform_indices = @transform_4, window_bounds = array<i64: 1, 32>}, {pipeline_mode = #tpu.pipeline_mode<synchronous>, transform_indices = @transform_5, window_bounds = array<i64: 8, 8>}, {pipeline_mode = #tpu.pipeline_mode<synchronous>, transform_indices = @transform_6, window_bounds = array<i64: 1, 8>}, {transform_indices = @transform_7, window_bounds = array<i64: 2, 8, 32>}]} {
    %c0 = arith.constant 0 : index
    %c0_0 = arith.constant 0 : index
    %c0_1 = arith.constant 0 : index
    %0 = vector.load %arg1[%c0, %c0_0, %c0_1] : memref<2x8x32xf32, #tpu.memory_space<vmem>>, vector<2x8x32xf32>
    %1 = vector.shape_cast %0 : vector<2x8x32xf32> to vector<16x32xf32>
    %c0_2 = arith.constant 0 : index
    %c0_3 = arith.constant 0 : index
    %2 = vector.load %arg2[%c0_2, %c0_3] : memref<32x32xf32, #tpu.memory_space<vmem>>, vector<32x32xf32>
    %cst = arith.constant dense<0.000000e+00> : vector<16x32xf32>
    %3 = tpu.matmul %1, %2, %cst {dimension_numbers = #tpu.dot_dimension_numbers<[1], [0], [0], [1], [0, 0, 1, 1], [], []>} : vector<16x32xf32>, vector<32x32xf32>, vector<16x32xf32> -> vector<16x32xf32>
    %c0_4 = arith.constant 0 : index
    %c0_5 = arith.constant 0 : index
    %4 = vector.load %arg3[%c0_4, %c0_5] : memref<1x32xf32, #tpu.memory_space<vmem>>, vector<1x32xf32>
    %5 = vector.broadcast %4 : vector<1x32xf32> to vector<16x32xf32>
    %6 = arith.addf %3, %5 : vector<16x32xf32>
    %7 = vector.shape_cast %6 : vector<16x32xf32> to vector<2x8x32xf32>
    %c0_6 = arith.constant 0 : index
    %c0_7 = arith.constant 0 : index
    %8 = vector.load %arg4[%c0_6, %c0_7] : memref<32x32xf32, #tpu.memory_space<vmem>>, vector<32x32xf32>
    %cst_8 = arith.constant dense<0.000000e+00> : vector<16x32xf32>
    %9 = tpu.matmul %1, %8, %cst_8 {dimension_numbers = #tpu.dot_dimension_numbers<[1], [0], [0], [1], [0, 0, 1, 1], [], []>} : vector<16x32xf32>, vector<32x32xf32>, vector<16x32xf32> -> vector<16x32xf32>
    %c0_9 = arith.constant 0 : index
    %c0_10 = arith.constant 0 : index
    %10 = vector.load %arg5[%c0_9, %c0_10] : memref<1x32xf32, #tpu.memory_space<vmem>>, vector<1x32xf32>
    %11 = vector.broadcast %10 : vector<1x32xf32> to vector<16x32xf32>
    %12 = arith.addf %9, %11 : vector<16x32xf32>
    %13 = vector.shape_cast %12 : vector<16x32xf32> to vector<2x8x32xf32>
    %c0_11 = arith.constant 0 : index
    %c0_12 = arith.constant 0 : index
    %14 = vector.load %arg7[%c0_11, %c0_12] : memref<1x8xf32, #tpu.memory_space<vmem>>, vector<1x8xf32>
    "tpu.trace_start"() <{level = 10 : i32, message = "tce,tde->tcd"}> : () -> ()
    %cst_13 = arith.constant dense<0.000000e+00> : vector<2x8x8xf32>
    %15 = tpu.matmul %7, %0, %cst_13 {dimension_numbers = #tpu.dot_dimension_numbers<[2], [2], [1], [1], [0, 0, 0, 1, 1, 1], [0], [0]>} : vector<2x8x32xf32>, vector<2x8x32xf32>, vector<2x8x8xf32> -> vector<2x8x8xf32>
    "tpu.trace_stop"() : () -> ()
    %16 = vector.shape_cast %15 : vector<2x8x8xf32> to vector<16x8xf32>
    %c0_14 = arith.constant 0 : index
    %c0_15 = arith.constant 0 : index
    %17 = vector.load %arg6[%c0_14, %c0_15] : memref<8x8xf32, #tpu.memory_space<vmem>>, vector<8x8xf32>
    %cst_16 = arith.constant dense<0.000000e+00> : vector<16x8xf32>
    %18 = tpu.matmul %16, %17, %cst_16 {dimension_numbers = #tpu.dot_dimension_numbers<[1], [0], [0], [1], [0, 0, 1, 1], [], []>} : vector<16x8xf32>, vector<8x8xf32>, vector<16x8xf32> -> vector<16x8xf32>
    %19 = vector.shape_cast %18 : vector<16x8xf32> to vector<2x8x8xf32>
    %cst_17 = arith.constant dense<0.000000e+00> : vector<2x8xf32>
    %20 = vector.multi_reduction <add>, %7, %cst_17 [2] : vector<2x8x32xf32> to vector<2x8xf32>
    %21 = vector.shape_cast %20 : vector<2x8xf32> to vector<2x8x1xf32>
    %22 = vector.shape_cast %14 : vector<1x8xf32> to vector<1x1x8xf32>
    %23 = vector.broadcast %21 : vector<2x8x1xf32> to vector<2x8x8xf32>
    %24 = vector.broadcast %22 : vector<1x1x8xf32> to vector<2x8x8xf32>
    %25 = arith.mulf %23, %24 : vector<2x8x8xf32>
    %26 = arith.addf %19, %25 : vector<2x8x8xf32>
    %cst_18 = arith.constant dense<0xFF800000> : vector<2x8xf32>
    %27 = vector.multi_reduction <maximumf>, %26, %cst_18 [2] : vector<2x8x8xf32> to vector<2x8xf32>
    %28 = vector.shape_cast %27 : vector<2x8xf32> to vector<2x8x1xf32>
    %29 = vector.broadcast %28 : vector<2x8x1xf32> to vector<2x8x8xf32>
    %30 = arith.subf %26, %29 : vector<2x8x8xf32>
    %31 = math.exp %30 : vector<2x8x8xf32>
    %cst_19 = arith.constant dense<0.000000e+00> : vector<2x8xf32>
    %32 = vector.multi_reduction <add>, %31, %cst_19 [2] : vector<2x8x8xf32> to vector<2x8xf32>
    %33 = vector.shape_cast %32 : vector<2x8xf32> to vector<2x8x1xf32>
    %34 = tpu.reciprocal %33 {approx = true} : vector<2x8x1xf32> -> vector<2x8x1xf32>
    %35 = arith.mulf %33, %34 : vector<2x8x1xf32>
    %cst_20 = arith.constant 2.000000e+00 : f32
    %36 = vector.broadcast %cst_20 : f32 to vector<2x8x1xf32>
    %37 = arith.subf %36, %35 : vector<2x8x1xf32>
    %38 = arith.mulf %34, %37 : vector<2x8x1xf32>
    %39 = vector.broadcast %38 : vector<2x8x1xf32> to vector<2x8x8xf32>
    %40 = arith.mulf %31, %39 : vector<2x8x8xf32>
    "tpu.trace_start"() <{level = 10 : i32, message = "tck,tke->tce"}> : () -> ()
    %cst_21 = arith.constant dense<0.000000e+00> : vector<2x8x32xf32>
    %41 = tpu.matmul %40, %13, %cst_21 {dimension_numbers = #tpu.dot_dimension_numbers<[2], [1], [1], [2], [0, 0, 0, 1, 1, 2], [0], [0]>} : vector<2x8x8xf32>, vector<2x8x32xf32>, vector<2x8x32xf32> -> vector<2x8x32xf32>
    "tpu.trace_stop"() : () -> ()
    %c0_22 = arith.constant 0 : index
    %c0_23 = arith.constant 0 : index
    %c0_24 = arith.constant 0 : index
    %42 = vector.load %arg8[%c0_22, %c0_23, %c0_24] : memref<2x8x32xf32, #tpu.memory_space<vmem>>, vector<2x8x32xf32>
    tpu.vector_store %arg8[%c0_22, %c0_23, %c0_24], %41 {strides = array<i32>} : memref<2x8x32xf32, #tpu.memory_space<vmem>>, vector<2x8x32xf32>,
    return
  }
  func.func @transform_0(%arg0: i32) -> (i32, i32, i32) {
    %c0_i32 = arith.constant 0 : i32
    %c0_i32_0 = arith.constant 0 : i32
    %c0_i32_1 = arith.constant 0 : i32
    return %arg0, %c0_i32, %c0_i32_0 : i32, i32, i32
  }
  func.func @transform_1(%arg0: i32) -> (i32, i32) {
    %c0_i32 = arith.constant 0 : i32
    %c0_i32_0 = arith.constant 0 : i32
    %c0_i32_1 = arith.constant 0 : i32
    return %c0_i32, %c0_i32_0 : i32, i32
  }
  func.func @transform_2(%arg0: i32) -> (i32, i32) {
    %c0_i32 = arith.constant 0 : i32
    %c0_i32_0 = arith.constant 0 : i32
    %c0_i32_1 = arith.constant 0 : i32
    return %c0_i32, %c0_i32_0 : i32, i32
  }
  func.func @transform_3(%arg0: i32) -> (i32, i32) {
    %c0_i32 = arith.constant 0 : i32
    %c0_i32_0 = arith.constant 0 : i32
    %c0_i32_1 = arith.constant 0 : i32
    return %c0_i32, %c0_i32_0 : i32, i32
  }
  func.func @transform_4(%arg0: i32) -> (i32, i32) {
    %c0_i32 = arith.constant 0 : i32
    %c0_i32_0 = arith.constant 0 : i32
    %c0_i32_1 = arith.constant 0 : i32
    return %c0_i32, %c0_i32_0 : i32, i32
  }
  func.func @transform_5(%arg0: i32) -> (i32, i32) {
    %c0_i32 = arith.constant 0 : i32
    %c0_i32_0 = arith.constant 0 : i32
    %c0_i32_1 = arith.constant 0 : i32
    return %c0_i32, %c0_i32_0 : i32, i32
  }
  func.func @transform_6(%arg0: i32) -> (i32, i32) {
    %c0_i32 = arith.constant 0 : i32
    %c0_i32_0 = arith.constant 0 : i32
    %c0_i32_1 = arith.constant 0 : i32
    return %c0_i32, %c0_i32_0 : i32, i32
  }
  func.func @transform_7(%arg0: i32) -> (i32, i32, i32) {
    %c0_i32 = arith.constant 0 : i32
    %c0_i32_0 = arith.constant 0 : i32
    %c0_i32_1 = arith.constant 0 : i32
    return %arg0, %c0_i32, %c0_i32_0 : i32, i32, i32
  }
}

</mosaic_0001>

<bundles_post_ra>
// kernel: tpu_custom_call.1
= control target key start
LH: loop header
LB: loop body
LE: loop exit
PB: predicated region body
PF: predicated region fallthrough
CT: control target
= control target key end

     0   :  { %12 = vsyncpa [#allocation3], 0  ;;  %s1051_s0 = inlined_call_operand.hbm [shape: f32[2,8,32], index: 0, kind: input, shape index: {}]   ;;  %s1052_s1 = inlined_call_operand.hbm [shape: f32[32,32], index: 1, kind: input, shape index: {}]   ;;  %s1053_s2 = inlined_call_operand.vmem [shape: f32[1,32], index: 2, kind: input, shape index: {}]   ;;  %s1054_s3 = inlined_call_operand.hbm [shape: f32[32,32], index: 3, kind: input, shape index: {}]   ;;  %s1055_s4 = inlined_call_operand.vmem [shape: f32[1,32], index: 4, kind: input, shape index: {}]   ;;  %s1056_s5 = inlined_call_operand.vmem [shape: f32[8,8], index: 5, kind: input, shape index: {}]   ;;  %s1057_s6 = inlined_call_operand.vmem [shape: f32[1,8], index: 6, kind: input, shape index: {}]   ;;  %s1058_s7 = inlined_call_operand.hbm [shape: f32[2,8,32], index: 7, kind: output, shape index: {}]  }
   0x1   :  { %13 = vsyncpa [#allocation6], 0 }
   0x2   :  { %14 = vsyncpa [#allocation4], 0  ;;  %s900_s24 = smov [#allocation5]   ;;  %s901_s26 = smov [#allocation2]  }
   0x3   :  { %s32_s25 = sshll.u32 %s900_s24, 4  ;;  %s20_s27 = sshll.u32 %s901_s26, 4  ;;  %s33_s25 = int_to_ptr.vmem [resolvable:$true] %s32_s25  ;;  %s948_s27 = int_to_ptr.vmem [resolvable:$true] %s20_s27 }
   0x4   :  { %s806_s30 = scalar_lea.hbm %s1052_s1, 512 }
   0x5   :  { %p807_p0 = scmp.ne.s32.totalorder %s1052_s1, %s806_s30  ;;  %p810_p1 = scmp.lt.u32.totalorder %s806_s30, %s1052_s1 }
   0x7   :  { %p812_p2 = pnand %p810_p1, %p807_p0 }
   0x9   :  { %815 = shalt.err (!%p812_p2)
}
   0xa   :  { %s816_s12 = scalar_lea.vmem %s33_s25, 512  ;;  %p821_p4 = scmp.lt.s32.totalorder %s33_s25, %s33_s25 }
   0xb   :  { %p817_p3 = scmp.ne.s32.totalorder %s33_s25, %s816_s12  ;;  %p822_p5 = scmp.lt.s32.totalorder %s816_s12, %s816_s12 }
   0xd   :  { %p823_p6 = por %p822_p5, %p821_p4 }
   0xf   :  { %p824_p7 = pnand %p823_p6, %p817_p3 }
  0x11   :  { %827 = shalt.err (!%p824_p7)
}
  0x12   :  { %s902_s13 = smov 128   ;;  %s903_s14 = smov 8  }
  0x13   :  { %38 = dma.hbm_to_vmem [thread:$0]  %s1052_s1, 512, %s33_s25, [#allocation6], %s902_s13, %s902_s13, %s903_s14  }
  0x14   :  { %s828_s19 = scalar_lea.hbm %s1051_s0, 256 }
  0x15   :  { %p829_p8 = scmp.ne.s32.totalorder %s1051_s0, %s828_s19  ;;  %p832_p9 = scmp.lt.u32.totalorder %s828_s19, %s1051_s0 }
  0x17   :  { %p834_p10 = pnand %p832_p9, %p829_p8 }
  0x19   :  { %837 = shalt.err (!%p834_p10)
}
  0x1a   :  { %s838_s24 = scalar_lea.vmem %s948_s27, 256  ;;  %p843_p12 = scmp.lt.s32.totalorder %s948_s27, %s948_s27 }
  0x1b   :  { %p839_p11 = scmp.ne.s32.totalorder %s948_s27, %s838_s24  ;;  %p844_p13 = scmp.lt.s32.totalorder %s838_s24, %s838_s24 }
  0x1d   :  { %p845_p0 = por %p844_p13, %p843_p12 }
  0x1f   :  { %p846_p1 = pnand %p845_p0, %p839_p11 }
  0x21   :  { %849 = shalt.err (!%p846_p1)
}
  0x22   :  { %26 = dma.hbm_to_vmem [thread:$0]  %s1051_s0, 256, %s948_s27, [#allocation3], %s902_s13, %s902_s13, %s903_s14  }
  0x23   :  { %s904_s26 = smov [#allocation7]   ;;  %s850_s8 = scalar_lea.hbm %s1054_s3, 512 }
  0x24   :  { %s46_s28 = sshll.u32 %s904_s26, 4  ;;  %p851_p2 = scmp.ne.s32.totalorder %s1054_s3, %s850_s8  ;;  %s47_s28 = int_to_ptr.vmem [resolvable:$true] %s46_s28 }
  0x25   :  { %p854_p3 = scmp.lt.u32.totalorder %s850_s8, %s1054_s3 }
  0x27   :  { %p856_p4 = pnand %p854_p3, %p851_p2 }
  0x29   :  { %859 = shalt.err (!%p856_p4)
}
  0x2a   :  { %s860_s15 = scalar_lea.vmem %s47_s28, 512  ;;  %p865_p6 = scmp.lt.s32.totalorder %s47_s28, %s47_s28 }
  0x2b   :  { %p861_p5 = scmp.ne.s32.totalorder %s47_s28, %s860_s15  ;;  %p866_p7 = scmp.lt.s32.totalorder %s860_s15, %s860_s15 }
  0x2d   :  { %p867_p8 = por %p866_p7, %p865_p6 }
  0x2f   :  { %p868_p9 = pnand %p867_p8, %p861_p5 }
  0x31   :  { %871 = shalt.err (!%p868_p9)
}
  0x32   :  { %52 = dma.hbm_to_vmem [thread:$0]  %s1054_s3, 512, %s47_s28, [#allocation6], %s902_s13, %s902_s13, %s903_s14  }
  0x33   :  { %894 = dma.done.wait [#allocation3], 256  }
  0x34   :  { %895 = vsyncadd [#allocation3], 4294967040 }
  0x35   :  { %896 = dma.done.wait [#allocation6], 1024  }
  0x36   :  { %897 = vsyncadd [#allocation6], 4294966272  ;;  %vm81_vm0 = vcmask 261120   ;;  %v70_v0 = vld [vmem:[#allocation5] sm:$0xff]  ;;  %v71_v1 = vld [vmem:[#allocation5 + $0x8] sm:$0xff]  ;;  %v905_v14 = vmov 0.0  }
  0x37   :  { %v72_v2 = vld [vmem:[#allocation5 + $0x10] sm:$0xff]  ;;  %v774_v3 = vpack.c.bf16 %v71_v1, %v70_v0  ;;  %v73_v4 = vld [vmem:[#allocation5 + $0x18] sm:$0xff]  ;;  %v163_v7 = vld [vmem:[#allocation7] sm:$0xff]  ;;  %vm906_vm1 = vmmov 0   ;;  %vm397_vm2 = vcmask 64512  }
  0x38   :  { %v68_v5 = vld [vmem:[#allocation2] sm:$0xff]  ;;  %v778_v6 = vpack.c.bf16 %v73_v4, %v72_v2  ;;  %v164_v8 = vld [vmem:[#allocation7 + $0x8] sm:$0xff]  ;;  %v166_v11 = vld [vmem:[#allocation7 + $0x18] sm:$0xff] }
  0x39   :  { %735 = vmatprep.mubr.msk.f32.mxu0 %vm81_vm0, %v68_v5  ;;  %v165_v9 = vld [vmem:[#allocation7 + $0x10] sm:$0xff]  ;;  %746 = vmatprep.mubr.msk.f32.mxu1 %vm81_vm0, %v68_v5  ;;  %v782_v10 = vpack.c.bf16 %v164_v8, %v163_v7  ;;  %v69_v13 = vld [vmem:[#allocation2 + $0x8] sm:$0xff] }
  0x3a   :  { %775 = vmatprep.subr.bf16.mxu0 %v774_v3  ;;  %v786_v12 = vpack.c.bf16 %v166_v11, %v165_v9  ;;  %v689_v15 = vld [vmem:[%s1053_s2] ss:$0 sm:$0xff] }
  0x3b   :  { %777 = vmatpush3.bf16.msra.mxu0 %v774_v3  ;;  %783 = vmatprep.subr.bf16.mxu1 %v782_v10  ;;  %v692_v23 = vld [vmem:[%s1055_s4] ss:$0 sm:$0xff] }
  0x3c   :  { %779 = vmatprep.subr.bf16.mxu0 %v778_v6  ;;  %785 = vmatpush3.bf16.msra.mxu1 %v782_v10  ;;  %v396_v24 = vld [vmem:[%s1056_s5] sm:$0xff] }
  0x3d   :  { %787 = vmatprep.subr.bf16.mxu1 %v786_v12  ;;  %v701_v33 = vld [vmem:[%s1057_s6] ss:$0 sm:$0xff]  ;;  %s907_s6 = smov [#allocation8]  }
  0x3e   :  { %s676_s20 = sshll.u32 %s907_s6, 4  ;;  %s677_s20 = int_to_ptr.vmem [resolvable:$true] %s676_s20 }
  0x3f   :  { %781 = vmatpush3.bf16.msra.mxu0 %v778_v6  ;;  %s872_s21 = scalar_lea.vmem %s677_s20, 256  ;;  %p877_p11 = scmp.lt.s32.totalorder %s677_s20, %s677_s20 }
  0x40   :  { %749 = vmatprep.subr.mxu0 %v905_v14  ;;  %789 = vmatpush3.bf16.msra.mxu1 %v786_v12  ;;  %p873_p10 = scmp.ne.s32.totalorder %s677_s20, %s872_s21  ;;  %p878_p12 = scmp.lt.s32.totalorder %s872_s21, %s872_s21 }
  0x41   :  { %754 = vmatprep.subr.mxu1 %v905_v14 }
  0x42   :  { %736 = vmatmul.mubr.msk.f32.vlgmr.msra.gmra.mrb[0].mxu0 %vm81_vm0, %v69_v13  ;;  %p879_p13 = por %p878_p12, %p877_p11 }
  0x43   :  { %747 = vmatmul.mubr.msk.f32.vlgmr.msra.gmra.mrb[0].mxu1 %vm81_vm0, %v69_v13  ;;  %751 = vmatprep.mubr.msk.f32.mxu0 %vm906_vm1, %v905_v14 }
  0x44   :  { %756 = vmatprep.mubr.msk.f32.mxu1 %vm906_vm1, %v905_v14  ;;  %p880_p0 = pnand %p879_p13, %p873_p10 }
  0x48   :  { %750 = vmatpush3.xpose.msk.msra.mxu0 %vm81_vm0, %v68_v5 }
  0x49   :  { %755 = vmatpush3.xpose.msk.msra.mxu1 %vm81_vm0, %v69_v13  ;;  %759 = vmatprep.subr.mxu0 %v396_v24 }
  0x4a   :  { %764 = vmatprep.subr.mxu1 %v905_v14 }
 0x115   :  { %v737_v16 = vpop.f32.mrb[0].mxu0 }
 0x116   :  { %v160_v17 = vadd.f32 %v737_v16, %v689_v15  ;;  %v154_v18 = vpop.f32.mrb[1].mxu0  ;;  %v748_v22 = vpop.f32.mrb[0].mxu1 }
 0x117   :  { %v155_v19 = vadd.f32 %v689_v15, %v154_v18  ;;  %v246_v25 = vadd.f32 %v748_v22, %v692_v23  ;;  %v240_v26 = vpop.f32.mrb[1].mxu1 }
 0x118   :  { %757 = vmatmul.mubr.msk.f32.vlgmr.msra.gmra.mrb[2].mxu1 %vm81_vm0, %v160_v17  ;;  %v482_v21 = vsel %vm81_vm0, %v160_v17, 0.0  ;;  %v241_v27 = vadd.f32 %v692_v23, %v240_v26 }
 0x119   :  { %752 = vmatmul.mubr.msk.f32.vlgmr.msra.gmra.mrb[2].mxu0 %vm81_vm0, %v155_v19  ;;  %v479_v20 = vsel %vm81_vm0, %v155_v19, 0.0  ;;  %766 = vmatprep.mubr.msk.f32.mxu1 %vm906_vm1, %v905_v14 }
 0x11a   :  { %480 = vadd.xlane.f32.xlu0 %v479_v20  ;;  %760 = vmatpush3.msra.mxu0 %v396_v24 }
 0x11b   :  { %769 = vmatprep.subr.mxu0 %v905_v14  ;;  %765 = vmatpush3.msra.mxu1 %v241_v27 }
 0x11e   :  { %483 = vadd.xlane.f32.xlu0 %v482_v21 }
 0x1a7   :  { %v481_v32 = vpop.xlane.xlu0 %480 }
 0x1a8   :  { %v491_v35 = vmul.f32 %v701_v33, %v481_v32 }
 0x1ab   :  { %v484_v34 = vpop.xlane.xlu0 %483 }
 0x1ac   :  { %v492_v38 = vmul.f32 %v701_v33, %v484_v34 }
 0x1eb   :  { %v392_v28 = vpop.f32.mrb[2].mxu1 }
 0x1ec   :  { %v319_v29 = vpop.f32.mrb[2].mxu0  ;;  %v758_v30 = vpop.f32.mrb[3].mxu1 }
 0x1ed   :  { %v753_v31 = vpop.f32.mrb[3].mxu0  ;;  %761 = vmatprep.mubr.msk.f32.mxu0 %vm397_vm2, %v319_v29 }
 0x1ee   :  { %762 = vmatmul.mubr.msk.f32.vlgmr.msra.gmra.mrb[4].mxu0 %vm397_vm2, %v392_v28 }
 0x1ef   :  { %770 = vmatpush3.msra.mxu0 %v246_v25  ;;  %771 = vmatprep.mubr.msk.f32.mxu0 %vm906_vm1, %v905_v14 }
 0x2c1   :  { %v763_v36 = vpop.f32.mrb[4].mxu0 }
 0x2c2   :  { %v470_v37 = vpop.f32.mrb[5].mxu0  ;;  %v494_v40 = vadd.f32 %v763_v36, %v492_v38 }
 0x2c3   :  { %v493_v39 = vadd.f32 %v491_v35, %v470_v37 }
 0x2c4   :  { %v498_v42 = vsel %vm397_vm2, %v494_v40, -inf }
 0x2c5   :  { %v495_v41 = vsel %vm397_vm2, %v493_v39, -inf }
 0x2c6   :  { %496 = vmax.xlane.f32.xlu1 %v495_v41 }
 0x2ca   :  { %499 = vmax.xlane.f32.xlu1 %v498_v42 }
 0x353   :  { %v497_v43 = vpop.xlane.xlu1 %496 }
 0x354   :  { %v501_v44 = vsub.f32 %v493_v39, %v497_v43 }
 0x356   :  { %v503_v45 = vmul.f32 1.442695, %v501_v44 }
 0x357   :  { %v500_v46 = vpop.xlane.xlu1 %499 }
 0x358   :  { %798 = vpow2.f32 %v503_v45  ;;  %v502_v47 = vsub.f32 %v494_v40, %v500_v46 }
 0x35a   :  { %v505_v48 = vmul.f32 1.442695, %v502_v47 }
 0x35c   :  { %800 = vpow2.f32 %v505_v48 }
 0x362   :  { %v799_v49 = vpop.eup %798 }
 0x363   :  { %v507_v50 = vsel %vm397_vm2, %v799_v49, 0.0 }
 0x364   :  { %508 = vadd.xlane.f32.xlu0 %v507_v50 }
 0x366   :  { %v801_v51 = vpop.eup %800 }
 0x367   :  { %v510_v52 = vsel %vm397_vm2, %v801_v51, 0.0 }
 0x368   :  { %511 = vadd.xlane.f32.xlu1 %v510_v52 }
 0x3f1   :  { %v509_v53 = vpop.xlane.xlu0 %508 }
 0x3f2   :  { %802 = vrcp.f32 %v509_v53 }
 0x3f5   :  { %v512_v54 = vpop.xlane.xlu1 %511 }
 0x3f6   :  { %804 = vrcp.f32 %v512_v54 }
 0x3fc   :  { %v803_v55 = vpop.eup %802 }
 0x3fd   :  { %v515_v56 = vmul.f32 %v803_v55, %v509_v53 }
 0x3ff   :  { %v517_v57 = vsub.f32 2.0, %v515_v56 }
 0x400   :  { %v805_v58 = vpop.eup %804 }
 0x401   :  { %v519_v59 = vmul.f32 %v803_v55, %v517_v57  ;;  %v516_v60 = vmul.f32 %v805_v58, %v512_v54 }
 0x403   :  { %v521_v61 = vmul.f32 %v799_v49, %v519_v59  ;;  %v518_v62 = vsub.f32 2.0, %v516_v60 }
 0x405   :  { %v520_v63 = vmul.f32 %v805_v58, %v518_v62  ;;  %767 = vmatmul.mubr.msk.f32.vlgmr.msra.gmra.mrb[4].mxu1 %vm397_vm2, %v521_v61 }
 0x407   :  { %v522_v0 = vmul.f32 %v801_v51, %v520_v63 }
 0x409   :  { %772 = vmatmul.mubr.msk.f32.vlgmr.msra.gmra.mrb[6].mxu0 %vm397_vm2, %v522_v0 }
 0x4d8   :  { %v592_v1 = vpop.f32.mrb[4].mxu1 }
 0x4d9   :  { %669 = vst.msk [vmem:[#allocation8] sm:$0xff] %vm81_vm0, %v592_v1  ;;  %v768_v2 = vpop.f32.mrb[5].mxu1 }
 0x4dc   :  { %v665_v3 = vpop.f32.mrb[6].mxu0 }
 0x4dd   :  { %670 = vst.msk [vmem:[#allocation8 + $0x8] sm:$0xff] %vm81_vm0, %v665_v3  ;;  %v773_v4 = vpop.f32.mrb[7].mxu0 }
 0x4de   :  { %883 = shalt.err (!%p880_p0)
}
 0x4df   :  { %s884_s24 = scalar_lea.hbm %s1058_s7, 256 }
 0x4e0   :  { %p885_p1 = scmp.ne.s32.totalorder %s1058_s7, %s884_s24  ;;  %p888_p2 = scmp.lt.u32.totalorder %s884_s24, %s1058_s7 }
 0x4e2   :  { %p890_p3 = pnand %p888_p2, %p885_p1 }
 0x4e4   :  { %893 = shalt.err (!%p890_p3)
}
 0x4e5   :  { %682 = dma.vmem_to_hbm [thread:$0]  %s677_s20, 256, %s1058_s7, [#allocation4], %s902_s13, %s902_s13, %s903_s14  }
 0x4e6   :  { %898 = dma.done.wait [#allocation4], 256  }
 0x4e7   :  { %899 = vsyncadd [#allocation4], 4294967040 }
 0x4e8   :  { %686 = vsyncpa [#allocation3], 1 }
 0x4e9   :  { %687 = vsyncpa [#allocation6], 1 }
 0x4ea   :  { %688 = vsyncpa [#allocation4], 1 }

</bundles_post_ra>
